<compile_context>
chip_gen: v5e
topology: v5e:2x2
jax: 0.10.0
libtpu: 0.0.40
codegen_flags: <defaults>
</compile_context>

<pallas_src>
import math

import jax
import jax.numpy as jnp
from jax.experimental import pallas as pl
from jax.experimental.pallas import tpu as pltpu


def _make_dyt_kernel(compute_dtype):
    def _dyt_kernel(alpha_ref, w_ref, b_ref, x_ref, o_ref):
        # alpha_ref: SMEM (1,) f32.  w_ref/b_ref: VMEM (1, tc) in compute dtype
        # (constant block index across the inner grid axis -> resident).
        # x_ref/o_ref: (tr, tc) tiles in x's dtype.
        alpha = alpha_ref[0].astype(compute_dtype)
        x = x_ref[...].astype(compute_dtype)          # no-op when dtypes match
        y = jnp.tanh(alpha * x)                       # EUP transcendental
        o_ref[...] = (y * w_ref[...] + b_ref[...]).astype(o_ref.dtype)
    return _dyt_kernel


def _round_up(a, b):
    return ((a + b - 1) // b) * b


def _tpu_generation():
    try:
        kind = jax.devices()[0].device_kind.lower()
    except Exception:
        return 0
    for g in (7, 6, 5, 4, 3, 2):
        if f"v{g}" in kind or f"tpu{g}" in kind:
            return g
    return 0


def dynamic_tanh(x, alpha, weight, bias, *,
                 target_block_bytes=None,
                 vmem_limit_bytes=None,
                 min_pallas_bytes=1 << 20):
    """Apply DynamicTanh along the last axis of x.

    x: (..., C); alpha: scalar / (1,); weight, bias: (C,)
    """
    orig_shape = x.shape
    C = orig_shape[-1]
    dtype = x.dtype
    itemsize = jnp.dtype(dtype).itemsize

    gen = _tpu_generation()
    # Generation-aware budgets (v5e/v6e have 128 MiB VMEM, v7x only 64 MiB/TC).
    if target_block_bytes is None:
        target_block_bytes = (4 << 20) if gen in (5, 6) else (2 << 20)
    if vmem_limit_bytes is None:
        if gen in (5, 6):
            vmem_limit_bytes = 64 << 20
        elif gen >= 7:
            vmem_limit_bytes = 40 << 20
        else:
            vmem_limit_bytes = 32 << 20

    alpha_f32 = jnp.asarray(alpha, dtype=jnp.float32).reshape(1)

    # ---- small-input fast path: pallas_call/DMA setup overhead dominates ----
    if x.size * itemsize < min_pallas_bytes:
        y = (jnp.tanh(alpha_f32[0] * x.astype(jnp.float32))
             * weight.astype(jnp.float32) + bias.astype(jnp.float32))
        return y.astype(dtype)

    x2 = x.reshape(-1, C)
    N = x2.shape[0]

    # Compute dtype: keep bf16 inputs in bf16 on v6e/v7x (stays memory-bound);
    # f32 compute everywhere else (v5e has no bf16 VPU/EUP).
    if dtype == jnp.bfloat16 and gen >= 6:
        compute_dtype = jnp.bfloat16
    else:
        compute_dtype = jnp.float32

    # ---- lane-dense packing: fold k rows into lanes ((N,C) -> (N/k, k*C)) ----
    # The reshape is a free contiguous view.  If N is not a multiple of k we
    # fall back to the unfolded layout (no HBM pad/slice round-trips ever).
    if C % 128 == 0:
        k = 1
    else:
        k = 128 // math.gcd(C, 128)          # smallest k with (k*C) % 128 == 0
        if N % k != 0:
            k = 1
    M, W = N // k, k * C
    xp = x2.reshape(M, W) if k > 1 else x2

    # ---- lane (channel) tile: prefer full width; split only if over budget ----
    min_rows = {4: 8, 2: 16, 1: 32}.get(itemsize, 8)
    if W % 128 == 0:
        n_units = W // 128
        max_units = max(1, target_block_bytes // (min_rows * 128 * itemsize))
        if n_units <= max_units:
            tc = W
        else:
            d = 1
            for cand in range(min(n_units, max_units), 0, -1):
                if n_units % cand == 0:
                    d = cand
                    break
            tc = d * 128
    else:
        tc = W                                # unfolded fallback: full-width block

    # ---- row tile: block-budget sized, capped to keep >= ~8 row grid steps ----
    tr_budget = max(min_rows,
                    (target_block_bytes // (tc * itemsize)) // min_rows * min_rows)
    tr_depth = _round_up(max(pl.cdiv(M, 8), 1), min_rows)
    tr = max(min_rows, min(tr_budget, tr_depth))
    if tr >= M:
        tr = M            # block spans the full row extent (always legal)

    n_lane = W // tc
    n_row = pl.cdiv(M, tr)        # ragged M -> partial last block handled by Pallas
    grid = (n_lane, n_row)        # lane axis OUTER: w/b blocks never re-DMA'd

    # ---- parameters: cast once, replicate across the lane fold ----
    w_packed = jnp.tile(weight.astype(compute_dtype).reshape(-1), (k,)).reshape(1, W)
    b_packed = jnp.tile(bias.astype(compute_dtype).reshape(-1), (k,)).reshape(1, W)

    out = pl.pallas_call(
        _make_dyt_kernel(compute_dtype),
        out_shape=jax.ShapeDtypeStruct((M, W), dtype),
        grid_spec=pltpu.PrefetchScalarGridSpec(
            num_scalar_prefetch=0,
            grid=grid,
            in_specs=[
                pl.BlockSpec(memory_space=pltpu.MemorySpace.SMEM),    # alpha scalar
                pl.BlockSpec((1, tc), lambda l, r: (0, l)),           # weight (packed)
                pl.BlockSpec((1, tc), lambda l, r: (0, l)),           # bias   (packed)
                pl.BlockSpec((tr, tc), lambda l, r: (r, l)),          # x tile
            ],
            out_specs=pl.BlockSpec((tr, tc), lambda l, r: (r, l)),    # y tile
        ),
        compiler_params=pltpu.CompilerParams(
            dimension_semantics=("parallel", "parallel"),
            vmem_limit_bytes=vmem_limit_bytes,
        ),
    )(alpha_f32, w_packed, b_packed, xp)

    return out.reshape(orig_shape)


if __name__ == "__main__":
    # Module parameters (deterministic init, matching DynamicTanh.__init__)
    C = 32                          # normalized_shape / hidden size
    alpha_init_value = 0.5
    alpha = jnp.full((1,), alpha_init_value, dtype=jnp.float32)   # torch.ones(1)*0.5
    weight = jnp.ones((C,), dtype=jnp.float32)                    # torch.ones(C)
    bias = jnp.zeros((C,), dtype=jnp.float32)                     # torch.zeros(C)

    key = jax.random.PRNGKey(0)
    k0, k1, k2, k3, k4, k5 = jax.random.split(key, 6)

    def ref(x, a, w, b):
        y = (jnp.tanh(a.reshape(()).astype(jnp.float32) * x.astype(jnp.float32))
             * w.astype(jnp.float32) + b.astype(jnp.float32))
        return y.astype(x.dtype)

    # Case 1: transformer-like activations (batch=2, seq=8, hidden=32), f32.
    #   default call -> small-input fast path; forced call -> Pallas (lane fold).
    x1 = jax.random.normal(k0, (2, 8, C), dtype=jnp.float32)
    y1_fast = jax.block_until_ready(dynamic_tanh(x1, alpha, weight, bias))
    y1_pal = jax.block_until_ready(
        dynamic_tanh(x1, alpha, weight, bias, min_pallas_bytes=0))
    r1 = ref(x1, alpha, weight, bias)
    assert y1_pal.shape == x1.shape
    assert jnp.allclose(y1_fast, r1, atol=2e-5, rtol=2e-5)
    assert jnp.allclose(y1_pal, r1, atol=2e-5, rtol=2e-5)

    # Case 2: ragged row count w.r.t. the lane fold + nontrivial weight/bias:
    #   exercises the unfolded fallback and a partial final row block.
    w2 = jax.random.normal(k1, (C,), jnp.float32)
    b2 = jax.random.normal(k2, (C,), jnp.float32)
    x2 = jax.random.normal(k3, (3, 7, C), jnp.float32)
    y2 = jax.block_until_ready(dynamic_tanh(x2, alpha, w2, b2, min_pallas_bytes=0))
    assert jnp.allclose(y2, ref(x2, alpha, w2, b2), atol=2e-5, rtol=2e-5)

    # Case 3: bf16 input (bf16 compute path on v6e/v7x, f32 elsewhere).
    x3 = jax.random.normal(k4, (2, 9, C), jnp.float32).astype(jnp.bfloat16)
    y3 = jax.block_until_ready(dynamic_tanh(x3, alpha, w2, b2, min_pallas_bytes=0))
    r3 = ref(x3, alpha, w2, b2)
    assert jnp.allclose(y3.astype(jnp.float32), r3.astype(jnp.float32),
                        atol=5e-2, rtol=5e-2)

    # Case 4: lane fold + row count not a multiple of the row tile
    #   (partial last row block handled inside Pallas, no pad/slice).
    x4 = jax.random.normal(k5, (4, 50, C), jnp.float32)
    y4 = jax.block_until_ready(dynamic_tanh(x4, alpha, w2, b2, min_pallas_bytes=0))
    assert jnp.allclose(y4, ref(x4, alpha, w2, b2), atol=2e-5, rtol=2e-5)

    # Case 5: moderate size (>1 MiB) through the default Pallas path with C=320
    #   (lane fold k=2, full-width lane tile, ~8 row grid steps).
    C5 = 320
    w5 = jax.random.normal(jax.random.fold_in(key, 10), (C5,), jnp.float32)
    b5 = jax.random.normal(jax.random.fold_in(key, 11), (C5,), jnp.float32)
    x5 = jax.random.normal(jax.random.fold_in(key, 12), (8, 128, C5), jnp.float32)
    y5 = jax.block_until_ready(dynamic_tanh(x5, alpha, w5, b5))
    assert jnp.allclose(y5, ref(x5, alpha, w5, b5), atol=2e-5, rtol=2e-5)

    print("KERNEL_OK")
</pallas_src>

<mosaic_0001>
module attributes {stable_mosaic.version = 11 : i64} {
  func.func @_dyt_kernel(%arg0: i32, %arg1: i32, %arg2: memref<1xf32, #tpu.memory_space<smem>>, %arg3: memref<1x128xf32, #tpu.memory_space<vmem>>, %arg4: memref<1x128xf32, #tpu.memory_space<vmem>>, %arg5: memref<4x128xf32, #tpu.memory_space<vmem>>, %arg6: memref<4x128xf32, #tpu.memory_space<vmem>>) attributes {dimension_semantics = [#tpu.dimension_semantics<parallel>, #tpu.dimension_semantics<parallel>], iteration_bounds = array<i64: 1, 1>, scalar_prefetch = 0 : i64, scratch_operands = 0 : i64, tpu.core_type = #tpu.core_type<tc>, window_params = [{transform_indices = @transform_0, window_bounds = array<i64: 1>}, {transform_indices = @transform_1, window_bounds = array<i64: 1, 128>}, {transform_indices = @transform_2, window_bounds = array<i64: 1, 128>}, {transform_indices = @transform_3, window_bounds = array<i64: 4, 128>}, {transform_indices = @transform_4, window_bounds = array<i64: 4, 128>}]} {
    %c0 = arith.constant 0 : index
    %0 = memref.load %arg2[%c0] : memref<1xf32, #tpu.memory_space<smem>>
    %c0_0 = arith.constant 0 : index
    %c0_1 = arith.constant 0 : index
    %1 = vector.load %arg5[%c0_0, %c0_1] : memref<4x128xf32, #tpu.memory_space<vmem>>, vector<4x128xf32>
    %2 = vector.broadcast %0 : f32 to vector<4x128xf32>
    %3 = arith.mulf %2, %1 : vector<4x128xf32>
    %4 = math.tanh %3 : vector<4x128xf32>
    %c0_2 = arith.constant 0 : index
    %c0_3 = arith.constant 0 : index
    %5 = vector.load %arg3[%c0_2, %c0_3] : memref<1x128xf32, #tpu.memory_space<vmem>>, vector<1x128xf32>
    %6 = vector.broadcast %5 : vector<1x128xf32> to vector<4x128xf32>
    %7 = arith.mulf %4, %6 : vector<4x128xf32>
    %c0_4 = arith.constant 0 : index
    %c0_5 = arith.constant 0 : index
    %8 = vector.load %arg4[%c0_4, %c0_5] : memref<1x128xf32, #tpu.memory_space<vmem>>, vector<1x128xf32>
    %9 = vector.broadcast %8 : vector<1x128xf32> to vector<4x128xf32>
    %10 = arith.addf %7, %9 : vector<4x128xf32>
    %c0_6 = arith.constant 0 : index
    %c0_7 = arith.constant 0 : index
    %11 = vector.load %arg6[%c0_6, %c0_7] : memref<4x128xf32, #tpu.memory_space<vmem>>, vector<4x128xf32>
    tpu.vector_store %arg6[%c0_6, %c0_7], %10 {strides = array<i32>} : memref<4x128xf32, #tpu.memory_space<vmem>>, vector<4x128xf32>,
    return
  }
  func.func @transform_0(%arg0: i32, %arg1: i32) -> i32 {
    %c0_i32 = arith.constant 0 : i32
    %c0_i32_0 = arith.constant 0 : i32
    return %c0_i32 : i32
  }
  func.func @transform_1(%arg0: i32, %arg1: i32) -> (i32, i32) {
    %c0_i32 = arith.constant 0 : i32
    %c0_i32_0 = arith.constant 0 : i32
    return %c0_i32, %arg0 : i32, i32
  }
  func.func @transform_2(%arg0: i32, %arg1: i32) -> (i32, i32) {
    %c0_i32 = arith.constant 0 : i32
    %c0_i32_0 = arith.constant 0 : i32
    return %c0_i32, %arg0 : i32, i32
  }
  func.func @transform_3(%arg0: i32, %arg1: i32) -> (i32, i32) {
    %c0_i32 = arith.constant 0 : i32
    return %arg1, %arg0 : i32, i32
  }
  func.func @transform_4(%arg0: i32, %arg1: i32) -> (i32, i32) {
    %c0_i32 = arith.constant 0 : i32
    return %arg1, %arg0 : i32, i32
  }
}

</mosaic_0001>

<bundles_post_ra>
// kernel: tpu_custom_call.1
= control target key start
LH: loop header
LB: loop body
LE: loop exit
PB: predicated region body
PF: predicated region fallthrough
CT: control target
= control target key end

     0   :  { %10 = vsyncpa [#allocation4], 0  ;;  %s166_s0 = inlined_call_operand.<no memory space> [shape: f32[1], index: 0, kind: input, shape index: {}]   ;;  %s167_s1 = inlined_call_operand.vmem [shape: f32[1,128], index: 1, kind: input, shape index: {}]   ;;  %s168_s2 = inlined_call_operand.vmem [shape: f32[1,128], index: 2, kind: input, shape index: {}]   ;;  %s169_s3 = inlined_call_operand.hbm [shape: f32[4,128], index: 3, kind: input, shape index: {}]   ;;  %s170_s4 = inlined_call_operand.hbm [shape: f32[4,128], index: 4, kind: output, shape index: {}]  }
   0x1   :  { %11 = vsyncpa [#allocation5], 0  ;;  %s23_s17 = sshll.u32 %s169_s3, 4  ;;  %s124_s18 = smov [#allocation3]   ;;  %s24_s17 = int_to_ptr.hbm [resolvable:$true] %s23_s17 }
   0x2   :  { %s25_s19 = sshll.u32 %s124_s18, 4  ;;  %s26_s19 = int_to_ptr.vmem [resolvable:$true] %s25_s19 }
   0x3   :  { %28 = dma.hbm_to_vmem [thread:$0]  %s24_s17, 64, %s26_s19, [#allocation4]  }
   0x4   :  { %120 = dma.done.wait [#allocation4], 64  }
   0x5   :  { %121 = vsyncadd [#allocation4], 4294967232  ;;  %v35_v0 = vstv %s166_s0  ;;  %v34_v1 = vld [vmem:[#allocation3] sm:$0xf]  ;;  %s125_s25 = smov [#allocation6]   ;;  %s56_s29 = sshll.u32 %s170_s4, 4  ;;  %s57_s29 = int_to_ptr.hbm [resolvable:$true] %s56_s29 }
   0x6   :  { %v36_v2 = vmul.f32 %v35_v0, %v34_v1  ;;  %v68_v3 = vld [vmem:[%s167_s1] ss:$0 sm:$0xff]  ;;  %s54_s26 = sshll.u32 %s125_s25, 4  ;;  %s55_s26 = int_to_ptr.vmem [resolvable:$true] %s54_s26 }
   0x7   :  { %v69_v4 = vld [vmem:[%s168_s2] ss:$0 sm:$0xff] }
   0x8   :  { %70 = vtanh.f32 %v36_v2 }
   0xe   :  { %v71_v5 = vpop.eup %70 }
   0xf   :  { %v42_v6 = vmul.f32 %v71_v5, %v68_v3 }
  0x11   :  { %v47_v7 = vadd.f32 %v69_v4, %v42_v6 }
  0x13   :  { %48 = vst [vmem:[#allocation6] sm:$0xf] %v47_v7 }
  0x14   :  { %59 = dma.vmem_to_hbm [thread:$0]  %s55_s26, 64, %s57_s29, [#allocation5]  }
  0x15   :  { %122 = dma.done.wait [#allocation5], 64  }
  0x16   :  { %123 = vsyncadd [#allocation5], 4294967232 }
  0x17   :  { %64 = vsyncpa [#allocation4], 1 }
  0x18   :  { %65 = vsyncpa [#allocation5], 1 }

</bundles_post_ra>
